<compile_context>
chip_gen: v7x
topology: tpu7x:2x2x1
jax: 0.10.0
libtpu: 0.0.40
codegen_flags: <defaults>
</compile_context>

<pallas_src>
import functools

import jax
import jax.numpy as jnp
from jax import lax
from jax.experimental import pallas as pl
from jax.experimental.pallas import tpu as pltpu

VMEM_SPEC = pl.BlockSpec(memory_space=pltpu.MemorySpace.VMEM)


def _round_up(x, m):
    return ((x + m - 1) // m) * m


# ------------------------- one-time parameter packing -----------------------

def pack_down_params(params, x_shape):
    """Pack weights / BN params / masks once (hoisted out of the call path)."""
    N, Cin, H, W = x_shape
    Cmid = params["w1"].shape[0]          # PreActBlock mid channels
    Cout = params["w2"].shape[0]          # PreActBlock out channels
    Hh, Wh = H // 2, W // 2               # pooled spatial size
    Hp, Wp = Hh + 2, Wh + 2               # zero-padded grid for the 3x3 convs
    Mp = N * Hp * Wp                      # flattened padded positions
    MpPad = _round_up(Mp, 128)            # lane-dense last dim (200 -> 256)
    Mv = N * Hh * Wh                      # valid positions (BN statistics)
    PAD = Wp + 1                          # largest |flattened 3x3 tap offset|
    OFF = _round_up(PAD, 128)             # lane-aligned staging offset
    BUFW = _round_up(OFF + MpPad + PAD, 128)

    # weights: OIHW -> (O, 9*I), column order = tap*I + ci, tap = di*3+dj
    w1m = jnp.transpose(params["w1"], (0, 2, 3, 1)).reshape(Cmid, 9 * Cin)
    wsc = params["w_sc"].reshape(Cout, Cin)
    # fold the 1x1 shortcut into the centre tap (tap index 4) of conv1
    wsc_rows = jnp.zeros((Cout, 9 * Cin), jnp.float32).at[:, 4 * Cin:5 * Cin].set(wsc)
    w1c = jnp.concatenate([w1m, wsc_rows], axis=0).astype(jnp.bfloat16)     # (Cmid+Cout, 9*Cin)
    w2m = jnp.transpose(params["w2"], (0, 2, 3, 1)).reshape(Cout, 9 * Cmid)
    w2m = w2m.astype(jnp.bfloat16)                                          # (Cout, 9*Cmid)

    g1 = params["bn1_g"].reshape(Cin, 1).astype(jnp.float32)
    b1 = params["bn1_b"].reshape(Cin, 1).astype(jnp.float32)
    g2 = params["bn2_g"].reshape(Cmid, 1).astype(jnp.float32)
    b2 = params["bn2_b"].reshape(Cmid, 1).astype(jnp.float32)

    # validity mask over the flattened padded grid (+ extra lanes = 0)
    mask = jnp.pad(jnp.ones((N, Hh, Wh), jnp.float32),
                   ((0, 0), (1, 1), (1, 1))).reshape(1, Mp)
    mask = jnp.pad(mask, ((0, 0), (0, MpPad - Mp)))

    cfg = dict(N=N, Cin=Cin, Cmid=Cmid, Cout=Cout, Hh=Hh, Wh=Wh, Hp=Hp, Wp=Wp,
               Mp=Mp, MpPad=MpPad, Mv=Mv, PAD=PAD, OFF=OFF, BUFW=BUFW)
    arrs = dict(w1c=w1c, w2m=w2m, g1=g1, b1=b1, g2=g2, b2=b2, mask=mask)
    return cfg, arrs


# ------------------------------ fused kernel --------------------------------

def _make_kernel(cfg):
    Cin, Cmid, Cout = cfg["Cin"], cfg["Cmid"], cfg["Cout"]
    MpPad, OFF, BUFW, Wp = cfg["MpPad"], cfg["OFF"], cfg["BUFW"], cfg["Wp"]
    CH = max(Cin, Cmid)
    inv_m = 1.0 / float(cfg["Mv"])
    taps = [(di - 1) * Wp + (dj - 1) for di in range(3) for dj in range(3)]

    def kernel(stack_ref, mask_ref, w1c_ref, w2_ref,
               g1_ref, b1_ref, g2_ref, b2_ref,
               out_ref, hbuf_ref, col1_ref, col2_ref):
        msk = mask_ref[...]                                        # (1, MpPad)

        # -- MaxPool2d(2): elementwise max of the four window taps (f32 VPU) --
        pooled = jnp.maximum(jnp.maximum(stack_ref[0], stack_ref[1]),
                             jnp.maximum(stack_ref[2], stack_ref[3]))  # (Cin, MpPad)

        def bn_relu(xm, g, b):
            # xm is exactly 0 at every pad-ring / extra lane, so plain lane
            # sums over all MpPad lanes divided by Mv give training-mode batch
            # statistics (biased variance).  Sum and sum-of-squares share ONE
            # cross-lane reduction (stacked along the sublane axis).
            C = xm.shape[0]
            both = jnp.concatenate([xm, xm * xm], axis=0)          # (2C, MpPad)
            sums = jnp.sum(both, axis=1, keepdims=True)            # (2C, 1)
            mean = sums[:C] * inv_m
            # NOTE: single-pass E[x^2]-mean^2 in f32 is fine at these
            # magnitudes; a two-pass form is safer for large real data.
            var = sums[C:] * inv_m - mean * mean
            y = (xm - mean) * lax.rsqrt(var + 1e-5) * g + b
            return jnp.maximum(y, 0.0) * msk          # re-zero the padding ring

        # Zero ONLY the staging margins (centre is always overwritten below);
        # both margins are lane-aligned 128-wide stores, no full-buffer pass.
        hbuf_ref[:, 0:OFF] = jnp.zeros((CH, OFF), jnp.float32)
        if BUFW > OFF + MpPad:
            hbuf_ref[:, OFF + MpPad:BUFW] = jnp.zeros(
                (CH, BUFW - OFF - MpPad), jnp.float32)

        # -- h = ReLU(BN1(pooled)), staged at lane-aligned offset OFF --
        h = bn_relu(pooled, g1_ref[...], b1_ref[...])              # (Cin, MpPad)
        hbuf_ref[0:Cin, OFF:OFF + MpPad] = h

        # -- conv1 (+ folded 1x1 shortcut) as ONE MXU matmul over K = 9*Cin --
        # im2col: 9 statically shifted slices -> bf16 operand (cast fused into
        # the copy), then a single dot instead of 9 tiny accumulated dots.
        for t, s in enumerate(taps):
            col1_ref[t * Cin:(t + 1) * Cin, :] = (
                hbuf_ref[0:Cin, OFF + s:OFF + s + MpPad].astype(jnp.bfloat16))
        acc1 = jnp.dot(w1c_ref[...], col1_ref[...],
                       preferred_element_type=jnp.float32)   # (Cmid+Cout, MpPad)
        o1 = acc1[:Cmid, :]
        shortcut = acc1[Cmid:, :]

        # -- h2 = ReLU(BN2(o1)) (mask first: pad lanes of o1 hold garbage) --
        h2 = bn_relu(o1 * msk, g2_ref[...], b2_ref[...])           # (Cmid, MpPad)
        hbuf_ref[0:Cmid, OFF:OFF + MpPad] = h2

        # -- conv2 as ONE MXU matmul over K = 9*Cmid, plus shortcut add --
        for t, s in enumerate(taps):
            col2_ref[t * Cmid:(t + 1) * Cmid, :] = (
                hbuf_ref[0:Cmid, OFF + s:OFF + s + MpPad].astype(jnp.bfloat16))
        out_ref[...] = shortcut + jnp.dot(w2_ref[...], col2_ref[...],
                                          preferred_element_type=jnp.float32)

    return kernel


def down_pallas(x, cfg, arrs):
    N, Cin = cfg["N"], cfg["Cin"]
    Cmid, Cout = cfg["Cmid"], cfg["Cout"]
    Hh, Wh, Hp, Wp = cfg["Hh"], cfg["Wh"], cfg["Hp"], cfg["Wp"]
    Mp, MpPad, BUFW = cfg["Mp"], cfg["MpPad"], cfg["BUFW"]
    CH = max(Cin, Cmid)

    # lane-dense input prep: ONE pad, then reshape/transpose to get the four
    # 2x2 pooling taps over the zero-padded pooled grid, flattened on lanes.
    xp = jnp.pad(x.astype(jnp.float32), ((0, 0), (0, 0), (2, 2), (2, 2)))
    stack = jnp.transpose(xp.reshape(N, Cin, Hp, 2, Wp, 2),
                          (3, 5, 1, 0, 2, 4)).reshape(4, Cin, Mp)
    stack = jnp.pad(stack, ((0, 0), (0, 0), (0, MpPad - Mp)))      # (4, Cin, 256)

    out_pad = pl.pallas_call(
        _make_kernel(cfg),
        out_shape=jax.ShapeDtypeStruct((Cout, MpPad), jnp.float32),
        in_specs=[VMEM_SPEC] * 8,
        out_specs=VMEM_SPEC,
        scratch_shapes=[
            pltpu.VMEM((CH, BUFW), jnp.float32),          # zero-margined staging
            pltpu.VMEM((9 * Cin, MpPad), jnp.bfloat16),   # conv1 im2col operand
            pltpu.VMEM((9 * Cmid, MpPad), jnp.bfloat16),  # conv2 im2col operand
        ],
    )(stack, arrs["mask"], arrs["w1c"], arrs["w2m"],
      arrs["g1"], arrs["b1"], arrs["g2"], arrs["b2"])

    # strip the extra lanes + padding ring and return NCHW
    out = out_pad[:, :Mp].reshape(Cout, N, Hp, Wp)[:, :, 1:1 + Hh, 1:1 + Wh]
    return jnp.transpose(out, (1, 0, 2, 3))


# --------------------------- pure-JAX reference -----------------------------

def _bn_ref(x, g, b):
    m = jnp.mean(x, axis=(0, 2, 3), keepdims=True)
    v = jnp.mean((x - m) ** 2, axis=(0, 2, 3), keepdims=True)
    return (x - m) * lax.rsqrt(v + 1e-5) * g.reshape(1, -1, 1, 1) + b.reshape(1, -1, 1, 1)


def _conv_ref(x, w, pad):
    return lax.conv_general_dilated(
        x, w, (1, 1), ((pad, pad), (pad, pad)),
        dimension_numbers=("NCHW", "OIHW", "NCHW"))


def down_ref(x, p):
    N, C, H, W = x.shape
    pooled = x.reshape(N, C, H // 2, 2, W // 2, 2).max(axis=(3, 5))
    out = jax.nn.relu(_bn_ref(pooled, p["bn1_g"], p["bn1_b"]))
    shortcut = _conv_ref(out, p["w_sc"], 0)
    out = _conv_ref(out, p["w1"], 1)
    out = jax.nn.relu(_bn_ref(out, p["bn2_g"], p["bn2_b"]))
    out = _conv_ref(out, p["w2"], 1)
    return out + shortcut


# ---------------------------------- main ------------------------------------

if __name__ == "__main__":
    N, Cin, Cout, H, W = 2, 4, 8, 16, 16
    key = jax.random.PRNGKey(0)
    k = jax.random.split(key, 4)
    x = jax.random.normal(k[0], (N, Cin, H, W), jnp.float32)

    params = dict(
        # PreActBlock conv weights (bias=False), deterministic init
        w1=jax.random.normal(k[1], (Cout, Cin, 3, 3), jnp.float32) * 0.1,
        w2=jax.random.normal(k[2], (Cout, Cout, 3, 3), jnp.float32) * 0.1,
        w_sc=jax.random.normal(k[3], (Cout, Cin, 1, 1), jnp.float32) * 0.1,
        # BatchNorm2d default init: weight=1, bias=0
        bn1_g=jnp.ones((Cin,), jnp.float32),
        bn1_b=jnp.zeros((Cin,), jnp.float32),
        bn2_g=jnp.ones((Cout,), jnp.float32),
        bn2_b=jnp.zeros((Cout,), jnp.float32),
    )

    # TODO(synk): BatchNorm running-statistics updates (a training-mode side
    # effect of the PyTorch module) are not reproduced; forward output only.

    # Pack parameters ONCE (outside the per-call path); jit closes over them.
    cfg, arrs = pack_down_params(params, x.shape)
    down_forward = jax.jit(functools.partial(down_pallas, cfg=cfg, arrs=arrs))

    out = jax.block_until_ready(down_forward(x))
    ref = down_ref(x, params)

    assert out.shape == (N, Cout, H // 2, W // 2), out.shape
    # bf16 MXU operands (f32 accumulation) introduce ~1e-2-level rounding noise
    # vs the all-f32 XLA reference.
    assert jnp.allclose(out, ref, atol=3e-2, rtol=3e-2), \
        float(jnp.max(jnp.abs(out - ref)))
    print("KERNEL_OK")
</pallas_src>

<mosaic_0001>
module attributes {stable_mosaic.version = 11 : i64} {
  func.func @kernel(%arg0: memref<4x4x256xf32, #tpu.memory_space<vmem>>, %arg1: memref<1x256xf32, #tpu.memory_space<vmem>>, %arg2: memref<16x36xbf16, #tpu.memory_space<vmem>>, %arg3: memref<8x72xbf16, #tpu.memory_space<vmem>>, %arg4: memref<4x1xf32, #tpu.memory_space<vmem>>, %arg5: memref<4x1xf32, #tpu.memory_space<vmem>>, %arg6: memref<8x1xf32, #tpu.memory_space<vmem>>, %arg7: memref<8x1xf32, #tpu.memory_space<vmem>>, %arg8: memref<8x256xf32, #tpu.memory_space<vmem>>, %arg9: memref<8x512xf32, #tpu.memory_space<vmem>>, %arg10: memref<36x256xbf16, #tpu.memory_space<vmem>>, %arg11: memref<72x256xbf16, #tpu.memory_space<vmem>>) attributes {dimension_semantics = [], scalar_prefetch = 0 : i64, scratch_operands = 3 : i64, tpu.core_type = #tpu.core_type<tc>} {
    %c0 = arith.constant 0 : index
    %c0_0 = arith.constant 0 : index
    %0 = vector.load %arg1[%c0, %c0_0] : memref<1x256xf32, #tpu.memory_space<vmem>>, vector<1x256xf32>
    %c0_1 = arith.constant 0 : index
    %c0_2 = arith.constant 0 : index
    %c0_3 = arith.constant 0 : index
    %1 = vector.load %arg0[%c0_1, %c0_2, %c0_3] : memref<4x4x256xf32, #tpu.memory_space<vmem>>, vector<1x4x256xf32>
    %2 = vector.shape_cast %1 : vector<1x4x256xf32> to vector<4x256xf32>
    %c1 = arith.constant 1 : index
    %c0_4 = arith.constant 0 : index
    %c0_5 = arith.constant 0 : index
    %3 = vector.load %arg0[%c1, %c0_4, %c0_5] : memref<4x4x256xf32, #tpu.memory_space<vmem>>, vector<1x4x256xf32>
    %4 = vector.shape_cast %3 : vector<1x4x256xf32> to vector<4x256xf32>
    %5 = arith.maximumf %2, %4 : vector<4x256xf32>
    %c2 = arith.constant 2 : index
    %c0_6 = arith.constant 0 : index
    %c0_7 = arith.constant 0 : index
    %6 = vector.load %arg0[%c2, %c0_6, %c0_7] : memref<4x4x256xf32, #tpu.memory_space<vmem>>, vector<1x4x256xf32>
    %7 = vector.shape_cast %6 : vector<1x4x256xf32> to vector<4x256xf32>
    %c3 = arith.constant 3 : index
    %c0_8 = arith.constant 0 : index
    %c0_9 = arith.constant 0 : index
    %8 = vector.load %arg0[%c3, %c0_8, %c0_9] : memref<4x4x256xf32, #tpu.memory_space<vmem>>, vector<1x4x256xf32>
    %9 = vector.shape_cast %8 : vector<1x4x256xf32> to vector<4x256xf32>
    %10 = arith.maximumf %7, %9 : vector<4x256xf32>
    %11 = arith.maximumf %5, %10 : vector<4x256xf32>
    %cst = arith.constant 0.000000e+00 : f32
    %12 = vector.broadcast %cst : f32 to vector<8x128xf32>
    %c0_10 = arith.constant 0 : index
    %c0_11 = arith.constant 0 : index
    %13 = vector.load %arg9[%c0_10, %c0_11] : memref<8x512xf32, #tpu.memory_space<vmem>>, vector<8x128xf32>
    tpu.vector_store %arg9[%c0_10, %c0_11], %12 {strides = array<i32>} : memref<8x512xf32, #tpu.memory_space<vmem>>, vector<8x128xf32>,
    %cst_12 = arith.constant 0.000000e+00 : f32
    %14 = vector.broadcast %cst_12 : f32 to vector<8x128xf32>
    %c0_13 = arith.constant 0 : index
    %c384 = arith.constant 384 : index
    %15 = vector.load %arg9[%c0_13, %c384] : memref<8x512xf32, #tpu.memory_space<vmem>>, vector<8x128xf32>
    tpu.vector_store %arg9[%c0_13, %c384], %14 {strides = array<i32>} : memref<8x512xf32, #tpu.memory_space<vmem>>, vector<8x128xf32>,
    %c0_14 = arith.constant 0 : index
    %c0_15 = arith.constant 0 : index
    %16 = vector.load %arg4[%c0_14, %c0_15] : memref<4x1xf32, #tpu.memory_space<vmem>>, vector<4x1xf32>
    %c0_16 = arith.constant 0 : index
    %c0_17 = arith.constant 0 : index
    %17 = vector.load %arg5[%c0_16, %c0_17] : memref<4x1xf32, #tpu.memory_space<vmem>>, vector<4x1xf32>
    %18 = arith.mulf %11, %11 : vector<4x256xf32>
    %19 = tpu.concatenate %11, %18 in 0 : vector<4x256xf32>, vector<4x256xf32> -> vector<8x256xf32>
    %cst_18 = arith.constant dense<0.000000e+00> : vector<8xf32>
    %20 = vector.multi_reduction <add>, %19, %cst_18 [1] : vector<8x256xf32> to vector<8xf32>
    %21 = vector.shape_cast %20 : vector<8xf32> to vector<8x1xf32>
    %22 = vector.extract_strided_slice %21 {offsets = [0, 0], sizes = [4, 1], strides = [1, 1]} : vector<8x1xf32> to vector<4x1xf32>
    %cst_19 = arith.constant 7.812500e-03 : f32
    %23 = vector.broadcast %cst_19 : f32 to vector<4x1xf32>
    %24 = arith.mulf %22, %23 : vector<4x1xf32>
    %25 = vector.extract_strided_slice %21 {offsets = [4, 0], sizes = [4, 1], strides = [1, 1]} : vector<8x1xf32> to vector<4x1xf32>
    %cst_20 = arith.constant 7.812500e-03 : f32
    %26 = vector.broadcast %cst_20 : f32 to vector<4x1xf32>
    %27 = arith.mulf %25, %26 : vector<4x1xf32>
    %28 = arith.mulf %24, %24 : vector<4x1xf32>
    %29 = arith.subf %27, %28 : vector<4x1xf32>
    %30 = vector.broadcast %24 : vector<4x1xf32> to vector<4x256xf32>
    %31 = arith.subf %11, %30 : vector<4x256xf32>
    %cst_21 = arith.constant 9.99999974E-6 : f32
    %32 = vector.broadcast %cst_21 : f32 to vector<4x1xf32>
    %33 = arith.addf %29, %32 : vector<4x1xf32>
    %34 = math.rsqrt %33 : vector<4x1xf32>
    %35 = vector.broadcast %34 : vector<4x1xf32> to vector<4x256xf32>
    %36 = arith.mulf %31, %35 : vector<4x256xf32>
    %37 = vector.broadcast %16 : vector<4x1xf32> to vector<4x256xf32>
    %38 = arith.mulf %36, %37 : vector<4x256xf32>
    %39 = vector.broadcast %17 : vector<4x1xf32> to vector<4x256xf32>
    %40 = arith.addf %38, %39 : vector<4x256xf32>
    %cst_22 = arith.constant 0.000000e+00 : f32
    %41 = vector.broadcast %cst_22 : f32 to vector<4x256xf32>
    %42 = arith.maximumf %40, %41 : vector<4x256xf32>
    %43 = vector.broadcast %0 : vector<1x256xf32> to vector<4x256xf32>
    %44 = arith.mulf %42, %43 : vector<4x256xf32>
    %c0_23 = arith.constant 0 : index
    %c128 = arith.constant 128 : index
    %45 = vector.load %arg9[%c0_23, %c128] : memref<8x512xf32, #tpu.memory_space<vmem>>, vector<4x256xf32>
    tpu.vector_store %arg9[%c0_23, %c128], %44 {strides = array<i32>} : memref<8x512xf32, #tpu.memory_space<vmem>>, vector<4x256xf32>,
    %c0_24 = arith.constant 0 : index
    %c117 = arith.constant 117 : index
    %46 = vector.load %arg9[%c0_24, %c117] : memref<8x512xf32, #tpu.memory_space<vmem>>, vector<4x256xf32>
    %47 = arith.truncf %46 : vector<4x256xf32> to vector<4x256xbf16>
    %c0_25 = arith.constant 0 : index
    %c0_26 = arith.constant 0 : index
    %48 = vector.load %arg10[%c0_25, %c0_26] : memref<36x256xbf16, #tpu.memory_space<vmem>>, vector<4x256xbf16>
    tpu.vector_store %arg10[%c0_25, %c0_26], %47 {strides = array<i32>} : memref<36x256xbf16, #tpu.memory_space<vmem>>, vector<4x256xbf16>,
    %c0_27 = arith.constant 0 : index
    %c118 = arith.constant 118 : index
    %49 = vector.load %arg9[%c0_27, %c118] : memref<8x512xf32, #tpu.memory_space<vmem>>, vector<4x256xf32>
    %50 = arith.truncf %49 : vector<4x256xf32> to vector<4x256xbf16>
    %c4 = arith.constant 4 : index
    %c0_28 = arith.constant 0 : index
    %51 = vector.load %arg10[%c4, %c0_28] : memref<36x256xbf16, #tpu.memory_space<vmem>>, vector<4x256xbf16>
    tpu.vector_store %arg10[%c4, %c0_28], %50 {strides = array<i32>} : memref<36x256xbf16, #tpu.memory_space<vmem>>, vector<4x256xbf16>,
    %c0_29 = arith.constant 0 : index
    %c119 = arith.constant 119 : index
    %52 = vector.load %arg9[%c0_29, %c119] : memref<8x512xf32, #tpu.memory_space<vmem>>, vector<4x256xf32>
    %53 = arith.truncf %52 : vector<4x256xf32> to vector<4x256xbf16>
    %c8 = arith.constant 8 : index
    %c0_30 = arith.constant 0 : index
    %54 = vector.load %arg10[%c8, %c0_30] : memref<36x256xbf16, #tpu.memory_space<vmem>>, vector<4x256xbf16>
    tpu.vector_store %arg10[%c8, %c0_30], %53 {strides = array<i32>} : memref<36x256xbf16, #tpu.memory_space<vmem>>, vector<4x256xbf16>,
    %c0_31 = arith.constant 0 : index
    %c127 = arith.constant 127 : index
    %55 = vector.load %arg9[%c0_31, %c127] : memref<8x512xf32, #tpu.memory_space<vmem>>, vector<4x256xf32>
    %56 = arith.truncf %55 : vector<4x256xf32> to vector<4x256xbf16>
    %c12 = arith.constant 12 : index
    %c0_32 = arith.constant 0 : index
    %57 = vector.load %arg10[%c12, %c0_32] : memref<36x256xbf16, #tpu.memory_space<vmem>>, vector<4x256xbf16>
    tpu.vector_store %arg10[%c12, %c0_32], %56 {strides = array<i32>} : memref<36x256xbf16, #tpu.memory_space<vmem>>, vector<4x256xbf16>,
    %c0_33 = arith.constant 0 : index
    %c128_34 = arith.constant 128 : index
    %58 = vector.load %arg9[%c0_33, %c128_34] : memref<8x512xf32, #tpu.memory_space<vmem>>, vector<4x256xf32>
    %59 = arith.truncf %58 : vector<4x256xf32> to vector<4x256xbf16>
    %c16 = arith.constant 16 : index
    %c0_35 = arith.constant 0 : index
    %60 = vector.load %arg10[%c16, %c0_35] : memref<36x256xbf16, #tpu.memory_space<vmem>>, vector<4x256xbf16>
    tpu.vector_store %arg10[%c16, %c0_35], %59 {strides = array<i32>} : memref<36x256xbf16, #tpu.memory_space<vmem>>, vector<4x256xbf16>,
    %c0_36 = arith.constant 0 : index
    %c129 = arith.constant 129 : index
    %61 = vector.load %arg9[%c0_36, %c129] : memref<8x512xf32, #tpu.memory_space<vmem>>, vector<4x256xf32>
    %62 = arith.truncf %61 : vector<4x256xf32> to vector<4x256xbf16>
    %c20 = arith.constant 20 : index
    %c0_37 = arith.constant 0 : index
    %63 = vector.load %arg10[%c20, %c0_37] : memref<36x256xbf16, #tpu.memory_space<vmem>>, vector<4x256xbf16>
    tpu.vector_store %arg10[%c20, %c0_37], %62 {strides = array<i32>} : memref<36x256xbf16, #tpu.memory_space<vmem>>, vector<4x256xbf16>,
    %c0_38 = arith.constant 0 : index
    %c137 = arith.constant 137 : index
    %64 = vector.load %arg9[%c0_38, %c137] : memref<8x512xf32, #tpu.memory_space<vmem>>, vector<4x256xf32>
    %65 = arith.truncf %64 : vector<4x256xf32> to vector<4x256xbf16>
    %c24 = arith.constant 24 : index
    %c0_39 = arith.constant 0 : index
    %66 = vector.load %arg10[%c24, %c0_39] : memref<36x256xbf16, #tpu.memory_space<vmem>>, vector<4x256xbf16>
    tpu.vector_store %arg10[%c24, %c0_39], %65 {strides = array<i32>} : memref<36x256xbf16, #tpu.memory_space<vmem>>, vector<4x256xbf16>,
    %c0_40 = arith.constant 0 : index
    %c138 = arith.constant 138 : index
    %67 = vector.load %arg9[%c0_40, %c138] : memref<8x512xf32, #tpu.memory_space<vmem>>, vector<4x256xf32>
    %68 = arith.truncf %67 : vector<4x256xf32> to vector<4x256xbf16>
    %c28 = arith.constant 28 : index
    %c0_41 = arith.constant 0 : index
    %69 = vector.load %arg10[%c28, %c0_41] : memref<36x256xbf16, #tpu.memory_space<vmem>>, vector<4x256xbf16>
    tpu.vector_store %arg10[%c28, %c0_41], %68 {strides = array<i32>} : memref<36x256xbf16, #tpu.memory_space<vmem>>, vector<4x256xbf16>,
    %c0_42 = arith.constant 0 : index
    %c139 = arith.constant 139 : index
    %70 = vector.load %arg9[%c0_42, %c139] : memref<8x512xf32, #tpu.memory_space<vmem>>, vector<4x256xf32>
    %71 = arith.truncf %70 : vector<4x256xf32> to vector<4x256xbf16>
    %c32 = arith.constant 32 : index
    %c0_43 = arith.constant 0 : index
    %72 = vector.load %arg10[%c32, %c0_43] : memref<36x256xbf16, #tpu.memory_space<vmem>>, vector<4x256xbf16>
    tpu.vector_store %arg10[%c32, %c0_43], %71 {strides = array<i32>} : memref<36x256xbf16, #tpu.memory_space<vmem>>, vector<4x256xbf16>,
    %c0_44 = arith.constant 0 : index
    %c0_45 = arith.constant 0 : index
    %73 = vector.load %arg2[%c0_44, %c0_45] : memref<16x36xbf16, #tpu.memory_space<vmem>>, vector<16x36xbf16>
    %c0_46 = arith.constant 0 : index
    %c0_47 = arith.constant 0 : index
    %74 = vector.load %arg10[%c0_46, %c0_47] : memref<36x256xbf16, #tpu.memory_space<vmem>>, vector<36x256xbf16>
    %cst_48 = arith.constant dense<0.000000e+00> : vector<16x256xf32>
    %75 = tpu.matmul %73, %74, %cst_48 {dimension_numbers = #tpu.dot_dimension_numbers<[1], [0], [0], [1], [0, 0, 1, 1], [], []>} : vector<16x36xbf16>, vector<36x256xbf16>, vector<16x256xf32> -> vector<16x256xf32>
    %76 = vector.extract_strided_slice %75 {offsets = [0, 0], sizes = [8, 256], strides = [1, 1]} : vector<16x256xf32> to vector<8x256xf32>
    %77 = vector.extract_strided_slice %75 {offsets = [8, 0], sizes = [8, 256], strides = [1, 1]} : vector<16x256xf32> to vector<8x256xf32>
    %78 = vector.broadcast %0 : vector<1x256xf32> to vector<8x256xf32>
    %79 = arith.mulf %76, %78 : vector<8x256xf32>
    %c0_49 = arith.constant 0 : index
    %c0_50 = arith.constant 0 : index
    %80 = vector.load %arg6[%c0_49, %c0_50] : memref<8x1xf32, #tpu.memory_space<vmem>>, vector<8x1xf32>
    %c0_51 = arith.constant 0 : index
    %c0_52 = arith.constant 0 : index
    %81 = vector.load %arg7[%c0_51, %c0_52] : memref<8x1xf32, #tpu.memory_space<vmem>>, vector<8x1xf32>
    %82 = arith.mulf %79, %79 : vector<8x256xf32>
    %83 = tpu.concatenate %79, %82 in 0 : vector<8x256xf32>, vector<8x256xf32> -> vector<16x256xf32>
    %cst_53 = arith.constant dense<0.000000e+00> : vector<16xf32>
    %84 = vector.multi_reduction <add>, %83, %cst_53 [1] : vector<16x256xf32> to vector<16xf32>
    %85 = vector.shape_cast %84 : vector<16xf32> to vector<16x1xf32>
    %86 = vector.extract_strided_slice %85 {offsets = [0, 0], sizes = [8, 1], strides = [1, 1]} : vector<16x1xf32> to vector<8x1xf32>
    %cst_54 = arith.constant 7.812500e-03 : f32
    %87 = vector.broadcast %cst_54 : f32 to vector<8x1xf32>
    %88 = arith.mulf %86, %87 : vector<8x1xf32>
    %89 = vector.extract_strided_slice %85 {offsets = [8, 0], sizes = [8, 1], strides = [1, 1]} : vector<16x1xf32> to vector<8x1xf32>
    %cst_55 = arith.constant 7.812500e-03 : f32
    %90 = vector.broadcast %cst_55 : f32 to vector<8x1xf32>
    %91 = arith.mulf %89, %90 : vector<8x1xf32>
    %92 = arith.mulf %88, %88 : vector<8x1xf32>
    %93 = arith.subf %91, %92 : vector<8x1xf32>
    %94 = vector.broadcast %88 : vector<8x1xf32> to vector<8x256xf32>
    %95 = arith.subf %79, %94 : vector<8x256xf32>
    %cst_56 = arith.constant 9.99999974E-6 : f32
    %96 = vector.broadcast %cst_56 : f32 to vector<8x1xf32>
    %97 = arith.addf %93, %96 : vector<8x1xf32>
    %98 = math.rsqrt %97 : vector<8x1xf32>
    %99 = vector.broadcast %98 : vector<8x1xf32> to vector<8x256xf32>
    %100 = arith.mulf %95, %99 : vector<8x256xf32>
    %101 = vector.broadcast %80 : vector<8x1xf32> to vector<8x256xf32>
    %102 = arith.mulf %100, %101 : vector<8x256xf32>
    %103 = vector.broadcast %81 : vector<8x1xf32> to vector<8x256xf32>
    %104 = arith.addf %102, %103 : vector<8x256xf32>
    %cst_57 = arith.constant 0.000000e+00 : f32
    %105 = vector.broadcast %cst_57 : f32 to vector<8x256xf32>
    %106 = arith.maximumf %104, %105 : vector<8x256xf32>
    %107 = vector.broadcast %0 : vector<1x256xf32> to vector<8x256xf32>
    %108 = arith.mulf %106, %107 : vector<8x256xf32>
    %c0_58 = arith.constant 0 : index
    %c128_59 = arith.constant 128 : index
    %109 = vector.load %arg9[%c0_58, %c128_59] : memref<8x512xf32, #tpu.memory_space<vmem>>, vector<8x256xf32>
    tpu.vector_store %arg9[%c0_58, %c128_59], %108 {strides = array<i32>} : memref<8x512xf32, #tpu.memory_space<vmem>>, vector<8x256xf32>,
    %c0_60 = arith.constant 0 : index
    %c117_61 = arith.constant 117 : index
    %110 = vector.load %arg9[%c0_60, %c117_61] : memref<8x512xf32, #tpu.memory_space<vmem>>, vector<8x256xf32>
    %111 = arith.truncf %110 : vector<8x256xf32> to vector<8x256xbf16>
    %c0_62 = arith.constant 0 : index
    %c0_63 = arith.constant 0 : index
    %112 = vector.load %arg11[%c0_62, %c0_63] : memref<72x256xbf16, #tpu.memory_space<vmem>>, vector<8x256xbf16>
    tpu.vector_store %arg11[%c0_62, %c0_63], %111 {strides = array<i32>} : memref<72x256xbf16, #tpu.memory_space<vmem>>, vector<8x256xbf16>,
    %c0_64 = arith.constant 0 : index
    %c118_65 = arith.constant 118 : index
    %113 = vector.load %arg9[%c0_64, %c118_65] : memref<8x512xf32, #tpu.memory_space<vmem>>, vector<8x256xf32>
    %114 = arith.truncf %113 : vector<8x256xf32> to vector<8x256xbf16>
    %c8_66 = arith.constant 8 : index
    %c0_67 = arith.constant 0 : index
    %115 = vector.load %arg11[%c8_66, %c0_67] : memref<72x256xbf16, #tpu.memory_space<vmem>>, vector<8x256xbf16>
    tpu.vector_store %arg11[%c8_66, %c0_67], %114 {strides = array<i32>} : memref<72x256xbf16, #tpu.memory_space<vmem>>, vector<8x256xbf16>,
    %c0_68 = arith.constant 0 : index
    %c119_69 = arith.constant 119 : index
    %116 = vector.load %arg9[%c0_68, %c119_69] : memref<8x512xf32, #tpu.memory_space<vmem>>, vector<8x256xf32>
    %117 = arith.truncf %116 : vector<8x256xf32> to vector<8x256xbf16>
    %c16_70 = arith.constant 16 : index
    %c0_71 = arith.constant 0 : index
    %118 = vector.load %arg11[%c16_70, %c0_71] : memref<72x256xbf16, #tpu.memory_space<vmem>>, vector<8x256xbf16>
    tpu.vector_store %arg11[%c16_70, %c0_71], %117 {strides = array<i32>} : memref<72x256xbf16, #tpu.memory_space<vmem>>, vector<8x256xbf16>,
    %c0_72 = arith.constant 0 : index
    %c127_73 = arith.constant 127 : index
    %119 = vector.load %arg9[%c0_72, %c127_73] : memref<8x512xf32, #tpu.memory_space<vmem>>, vector<8x256xf32>
    %120 = arith.truncf %119 : vector<8x256xf32> to vector<8x256xbf16>
    %c24_74 = arith.constant 24 : index
    %c0_75 = arith.constant 0 : index
    %121 = vector.load %arg11[%c24_74, %c0_75] : memref<72x256xbf16, #tpu.memory_space<vmem>>, vector<8x256xbf16>
    tpu.vector_store %arg11[%c24_74, %c0_75], %120 {strides = array<i32>} : memref<72x256xbf16, #tpu.memory_space<vmem>>, vector<8x256xbf16>,
    %c0_76 = arith.constant 0 : index
    %c128_77 = arith.constant 128 : index
    %122 = vector.load %arg9[%c0_76, %c128_77] : memref<8x512xf32, #tpu.memory_space<vmem>>, vector<8x256xf32>
    %123 = arith.truncf %122 : vector<8x256xf32> to vector<8x256xbf16>
    %c32_78 = arith.constant 32 : index
    %c0_79 = arith.constant 0 : index
    %124 = vector.load %arg11[%c32_78, %c0_79] : memref<72x256xbf16, #tpu.memory_space<vmem>>, vector<8x256xbf16>
    tpu.vector_store %arg11[%c32_78, %c0_79], %123 {strides = array<i32>} : memref<72x256xbf16, #tpu.memory_space<vmem>>, vector<8x256xbf16>,
    %c0_80 = arith.constant 0 : index
    %c129_81 = arith.constant 129 : index
    %125 = vector.load %arg9[%c0_80, %c129_81] : memref<8x512xf32, #tpu.memory_space<vmem>>, vector<8x256xf32>
    %126 = arith.truncf %125 : vector<8x256xf32> to vector<8x256xbf16>
    %c40 = arith.constant 40 : index
    %c0_82 = arith.constant 0 : index
    %127 = vector.load %arg11[%c40, %c0_82] : memref<72x256xbf16, #tpu.memory_space<vmem>>, vector<8x256xbf16>
    tpu.vector_store %arg11[%c40, %c0_82], %126 {strides = array<i32>} : memref<72x256xbf16, #tpu.memory_space<vmem>>, vector<8x256xbf16>,
    %c0_83 = arith.constant 0 : index
    %c137_84 = arith.constant 137 : index
    %128 = vector.load %arg9[%c0_83, %c137_84] : memref<8x512xf32, #tpu.memory_space<vmem>>, vector<8x256xf32>
    %129 = arith.truncf %128 : vector<8x256xf32> to vector<8x256xbf16>
    %c48 = arith.constant 48 : index
    %c0_85 = arith.constant 0 : index
    %130 = vector.load %arg11[%c48, %c0_85] : memref<72x256xbf16, #tpu.memory_space<vmem>>, vector<8x256xbf16>
    tpu.vector_store %arg11[%c48, %c0_85], %129 {strides = array<i32>} : memref<72x256xbf16, #tpu.memory_space<vmem>>, vector<8x256xbf16>,
    %c0_86 = arith.constant 0 : index
    %c138_87 = arith.constant 138 : index
    %131 = vector.load %arg9[%c0_86, %c138_87] : memref<8x512xf32, #tpu.memory_space<vmem>>, vector<8x256xf32>
    %132 = arith.truncf %131 : vector<8x256xf32> to vector<8x256xbf16>
    %c56 = arith.constant 56 : index
    %c0_88 = arith.constant 0 : index
    %133 = vector.load %arg11[%c56, %c0_88] : memref<72x256xbf16, #tpu.memory_space<vmem>>, vector<8x256xbf16>
    tpu.vector_store %arg11[%c56, %c0_88], %132 {strides = array<i32>} : memref<72x256xbf16, #tpu.memory_space<vmem>>, vector<8x256xbf16>,
    %c0_89 = arith.constant 0 : index
    %c139_90 = arith.constant 139 : index
    %134 = vector.load %arg9[%c0_89, %c139_90] : memref<8x512xf32, #tpu.memory_space<vmem>>, vector<8x256xf32>
    %135 = arith.truncf %134 : vector<8x256xf32> to vector<8x256xbf16>
    %c64 = arith.constant 64 : index
    %c0_91 = arith.constant 0 : index
    %136 = vector.load %arg11[%c64, %c0_91] : memref<72x256xbf16, #tpu.memory_space<vmem>>, vector<8x256xbf16>
    tpu.vector_store %arg11[%c64, %c0_91], %135 {strides = array<i32>} : memref<72x256xbf16, #tpu.memory_space<vmem>>, vector<8x256xbf16>,
    %c0_92 = arith.constant 0 : index
    %c0_93 = arith.constant 0 : index
    %137 = vector.load %arg3[%c0_92, %c0_93] : memref<8x72xbf16, #tpu.memory_space<vmem>>, vector<8x72xbf16>
    %c0_94 = arith.constant 0 : index
    %c0_95 = arith.constant 0 : index
    %138 = vector.load %arg11[%c0_94, %c0_95] : memref<72x256xbf16, #tpu.memory_space<vmem>>, vector<72x256xbf16>
    %cst_96 = arith.constant dense<0.000000e+00> : vector<8x256xf32>
    %139 = tpu.matmul %137, %138, %cst_96 {dimension_numbers = #tpu.dot_dimension_numbers<[1], [0], [0], [1], [0, 0, 1, 1], [], []>} : vector<8x72xbf16>, vector<72x256xbf16>, vector<8x256xf32> -> vector<8x256xf32>
    %140 = arith.addf %77, %139 : vector<8x256xf32>
    %c0_97 = arith.constant 0 : index
    %c0_98 = arith.constant 0 : index
    %141 = vector.load %arg8[%c0_97, %c0_98] : memref<8x256xf32, #tpu.memory_space<vmem>>, vector<8x256xf32>
    tpu.vector_store %arg8[%c0_97, %c0_98], %140 {strides = array<i32>} : memref<8x256xf32, #tpu.memory_space<vmem>>, vector<8x256xf32>,
    return
  }
}

</mosaic_0001>

<bundles_post_ra>
// kernel: down_pallas.1
= control target key start
LH: loop header
LB: loop body
LE: loop exit
PB: predicated region body
PF: predicated region fallthrough
CT: control target
= control target key end

     0   :  { %vm52_vm0 = vcmask 1043456   ;;  %v924_v13 = vmov 0   ;;  %v925_v22 = vmov 0.0   ;;  %s928_s16 = smov 118   ;;  %v929_v32 = vmov 839922192   ;;  %s1116_s0 = inlined_call_operand.vmem [shape: f32[4,4,256], index: 0, kind: input, shape index: {}]   ;;  %s1117_s4 = inlined_call_operand.vmem [shape: f32[4,1], index: 4, kind: input, shape index: {}]   ;;  %s1118_s5 = inlined_call_operand.vmem [shape: f32[4,1], index: 5, kind: input, shape index: {}]   ;;  %s1119_s1 = inlined_call_operand.vmem [shape: f32[1,256], index: 1, kind: input, shape index: {}]   ;;  %s1120_s2 = inlined_call_operand.vmem [shape: bf16[16,36], index: 2, kind: input, shape index: {}]   ;;  %s1121_s7 = inlined_call_operand.vmem [shape: f32[8,1], index: 7, kind: input, shape index: {}]   ;;  %s1122_s6 = inlined_call_operand.vmem [shape: f32[8,1], index: 6, kind: input, shape index: {}]   ;;  %s1123_s3 = inlined_call_operand.vmem [shape: bf16[8,72], index: 3, kind: input, shape index: {}]   ;;  %s1124_s8 = inlined_call_operand.vmem [shape: f32[8,256], index: 8, kind: output, shape index: {}]  }
   0x1   :  { %v31_v0 = vld [vmem:[%s1116_s0] sm:$0xff]  ;;  %v805_v1 = vld [vmem:[%s1116_s0 + $0x8] sm:$0xff]  ;;  %v806_v2 = vld [vmem:[%s1116_s0 + $0x10] sm:$0xff]  ;;  %910 = vset.pattern.permute.xlu1 %v924_v13  ;;  %909 = vset.pattern.permute.xlu0 %v924_v13  ;;  %42 = vst [vmem:[#allocation2 + $0x18] sm:$0xff] %v925_v22  ;;  %v66_v33 = vunpack.c.l.s4 %v929_v32  ;;  %v68_v34 = vlaneseq  ;;  %v930_v37 = vmov 1985246804  }
   0x2   :  { %v34_v3 = vmax.f32 %v31_v0, %v805_v1  ;;  %v807_v4 = vld [vmem:[%s1116_s0 + $0x18] sm:$0xff]  ;;  %v43_v14 = vld [vmem:[%s1117_s4] sm:$0xf]  ;;  %433 = vmatprep.mubr.bf16.mxu0 %v924_v13  ;;  %788 = vmatprep.mubr.bf16.mxu1 %v924_v13  ;;  %41 = vst [vmem:[#allocation2] sm:$0xff] %v925_v22  ;;  %s926_s4 = smov 127   ;;  %v81_v38 = vunpack.c.l.s4 %v930_v37  ;;  %s932_s19 = smov 9  }
   0x3   :  { %v39_v5 = vmax.f32 %v806_v2, %v807_v4  ;;  %91 = vperm.xlu1 %910, %v43_v14   ;;  %v44_v15 = vld [vmem:[%s1118_s5] sm:$0xf]  ;;  %s927_s5 = smov 119   ;;  %v67_v35 = vunpack.c.0.s8 %v66_v33  ;;  %v69_v36 = vshrl.u32 %v68_v34, 7  ;;  %s933_s20 = smov 117   ;;  %vm297_vm1 = vcmask 973824  }
   0x4   :  { %v82_v40 = vunpack.c.0.s8 %v81_v38  ;;  %v30_v46 = vld [vmem:[%s1119_s1] sm:$0x3]  ;;  %s931_s1 = smov 11   ;;  %s934_s21 = smov 10   ;;  %vm324_vm2 = vcmask 965632   ;;  %vm155_vm3 = vcmask 89088  }
   0x5   :  { %v994_v6 = vmax.f32 %v34_v3, %v39_v5  ;;  %v70_v39 = vsub.s32 %v67_v35, %v69_v36  ;;  %v119_v44 = vsub.s32 0, %v69_v36  ;;  %v123_v45 = vsub.s32 1, %v69_v36  ;;  %s935_s22 = smov 1  }
   0x6   :  { %v85_v43 = vsub.s32 %v82_v40, %v69_v36  ;;  %vm207_vm4 = vcmask 72704   ;;  %vm182_vm5 = vcmask 80896   ;;  %vm234_vm6 = vcmask 7168  }
   0x7   :  { %v45_v7 = vmul.f32 %v994_v6, %v994_v6  ;;  %v47_v8 = vcombine.high %v994_v6, %v994_v6  ;;  %104 = vperm.xlu1 %910, %v44_v15   ;;  %v1018_v52 = vrot.slane %v30_v46, %v119_v44  ;;  %v1020_v53 = vrot.slane %v30_v46, %v123_v45 }
   0x8   :  { %v251_v24 = vld [vmem:[#allocation2 + $0x18] sm:$0xf]  ;;  %vm272_vm7 = vcmask 1039360   ;;  %vm349_vm8 = vcmask 957440   ;;  %vm394_vm9 = vcmask 1041408   ;;  %vm390_vm10 = vcmask 293888  }
   0x9   :  { %v50_v9 = vcombine.low %v45_v7, %v45_v7  ;;  %v54_v10 = vsel %vm52_vm0, %v47_v8, %v45_v7  ;;  %v873_v25 = vpack.c.bf16 %v251_v24, %v251_v24  ;;  %v278_v27 = vld [vmem:[#allocation2 + $0x18] sm:$0xf]  ;;  %v125_v57 = vcombine.low %v1018_v52, %v1020_v53  ;;  %v133_v62 = vld [vmem:[#allocation2] sm:$0xf] }
   0xa   :  { %v875_v28 = vpack.c.bf16 %v278_v27, %v278_v27  ;;  %v303_v29 = vld [vmem:[#allocation2 + $0x18] sm:$0xf]  ;;  %v186_v2 = vld [vmem:[#allocation2] sm:$0xf]  ;;  %vm746_vm11 = vcmask 588800  }
   0xb   :  { %v53_v11 = vsel %vm52_vm0, %v994_v6, %v50_v9  ;;  %v264_v26 = vrot.slane %v873_v25, 6  ;;  %v877_v30 = vpack.c.bf16 %v303_v29, %v303_v29  ;;  %v211_v25 = vld [vmem:[#allocation2] sm:$0xf] }
   0xc   :  { %v55_v12 = vadd.f32 %v54_v10, %v53_v11  ;;  %v159_v10 = vld [vmem:[#allocation2] sm:$0xf] }
   0xd   :  { %267 = vrot.lane.b32.xlu1 %v264_v26, %s926_s4  ;;  %v316_v31 = vrot.slane %v877_v30, 6 }
   0xe   :  { %56 = vadd.xlane.f32.xlu0 %v55_v12 }
  0x11   :  { %292 = vrot.lane.b32.xlu1 %v875_v28, %s927_s5 }
  0x15   :  { %319 = vrot.lane.b32.xlu1 %v316_v31, %s928_s16 }
  0x82   :  { %v92_v41 = vpop.permute.xlu1 %91 }
  0x83   :  { %v99_v51 = vrot.slane %v92_v41, %v70_v39 }
  0x86   :  { %v105_v50 = vpop.permute.xlu1 %104 }
  0x87   :  { %v112_v55 = vrot.slane %v105_v50, %v70_v39 }
  0x9b   :  { %v57_v16 = vpop.xlane.xlu0 %56 }
  0x9c   :  { %v58_v17 = vmul.f32 0.0078125, %v57_v16 }
  0x9e   :  { %v59_v18 = vmul.f32 %v58_v17, %v58_v17  ;;  %v71_v42 = vrot.slane %v58_v17, %v70_v39  ;;  %v330_v39 = vld [vmem:[#allocation2 + $0x18] sm:$0xf] }
  0x9f   :  { %v879_v41 = vpack.c.bf16 %v330_v39, %v330_v39 }
  0xa0   :  { %v61_v19 = vrot.slane %v59_v18, 4  ;;  %v73_v48 = vsub.f32 %v994_v6, %v71_v42  ;;  %v268_v42 = vpop.permute.xlu1 %267 }
  0xa2   :  { %v63_v20 = vsub.f32 %v58_v17, %v61_v19 }
  0xa4   :  { %v74_v21 = vadd.f32 1e-05, %v63_v20 }
  0xa6   :  { %920 = vrsqrt.f32 %v74_v21 }
  0xb0   :  { %v921_v23 = vpop.eup %920 }
  0xb1   :  { %78 = vperm.xlu0 %909, %v921_v23  }
 0x130   :  { %v79_v47 = vpop.permute.xlu0 %78 }
 0x131   :  { %v86_v49 = vrot.slane %v79_v47, %v85_v43  ;;  %v293_v43 = vpop.permute.xlu1 %292 }
 0x132   :  { %v295_v47 = vrot.slane %v293_v43, 4 }
 0x133   :  { %v88_v54 = vmul.f32 %v86_v49, %v73_v48 }
 0x135   :  { %v101_v56 = vmul.f32 %v99_v51, %v88_v54  ;;  %v320_v44 = vpop.permute.xlu1 %319 }
 0x137   :  { %v114_v58 = vadd.f32 %v112_v55, %v101_v56  ;;  %v322_v55 = vrot.slane %v320_v44, 4 }
 0x139   :  { %v115_v59 = vmax.f32 %v114_v58, 0.0 }
 0x13b   :  { %v127_v60 = vmul.f32 %v125_v57, %v115_v59 }
 0x13d   :  { %v129_v61 = vcombine.high %v127_v60, %v127_v60  ;;  %131 = vst [vmem:[#allocation2 + $0x8] sm:$0xf] %v127_v60 }
 0x13f   :  { %132 = vst [vmem:[#allocation2 + $0x10] sm:$0xf] %v129_v61 }
 0x144   :  { %v134_v63 = vld [vmem:[#allocation2 + $0x8] sm:$0xf] }
 0x145   :  { %v863_v0 = vpack.c.bf16 %v134_v63, %v133_v62  ;;  %v276_v1 = vld [vmem:[#allocation2 + $0x8] sm:$0xf] }
 0x146   :  { %v187_v3 = vld [vmem:[#allocation2 + $0x8] sm:$0xf]  ;;  %v277_v4 = vld [vmem:[#allocation2 + $0x10] sm:$0xf] }
 0x147   :  { %v301_v5 = vld [vmem:[#allocation2 + $0x8] sm:$0xf]  ;;  %v302_v6 = vld [vmem:[#allocation2 + $0x10] sm:$0xf]  ;;  %147 = vrot.lane.b32.xlu1 %v863_v0, %s931_s1  ;;  %v874_v7 = vpack.c.bf16 %v277_v4, %v276_v1  ;;  %v867_v9 = vpack.c.bf16 %v187_v3, %v186_v2 }
 0x148   :  { %v876_v8 = vpack.c.bf16 %v302_v6, %v301_v5  ;;  %v160_v11 = vld [vmem:[#allocation2 + $0x8] sm:$0xf]  ;;  %v135_v12 = vld [vmem:[#allocation2 + $0x10] sm:$0xf] }
 0x149   :  { %290 = vrot.lane.b32.xlu0 %v874_v7, %s927_s5  ;;  %v238_v13 = vld [vmem:[#allocation2 + $0x8] sm:$0xf]  ;;  %v239_v14 = vld [vmem:[#allocation2 + $0x10] sm:$0xf]  ;;  %v864_v18 = vpack.c.bf16 %v135_v12, %v135_v12  ;;  %v865_v19 = vpack.c.bf16 %v160_v11, %v159_v10 }
 0x14a   :  { %v315_v15 = vrot.slane %v876_v8, 6  ;;  %v871_v16 = vpack.c.bf16 %v239_v14, %v238_v13  ;;  %v329_v17 = vld [vmem:[#allocation2 + $0x10] sm:$0xf]  ;;  %v328_v20 = vld [vmem:[#allocation2 + $0x8] sm:$0xf] }
 0x14b   :  { %200 = vrot.lane.b32.xlu1 %v867_v9, %s932_s19  ;;  %v878_v21 = vpack.c.bf16 %v329_v17, %v328_v20  ;;  %v173_v23 = vrot.slane %v865_v19, 6  ;;  %v188_v24 = vld [vmem:[#allocation2 + $0x10] sm:$0xf]  ;;  %v212_v26 = vld [vmem:[#allocation2 + $0x8] sm:$0xf] }
 0x14c   :  { %248 = vst [vmem:[#allocation3 + $0x10] sm:$0x33] %v871_v16  ;;  %v868_v27 = vpack.c.bf16 %v188_v24, %v188_v24  ;;  %v869_v28 = vpack.c.bf16 %v212_v26, %v211_v25  ;;  %v161_v29 = vld [vmem:[#allocation2 + $0x10] sm:$0xf]  ;;  %v249_v36 = vld [vmem:[#allocation2 + $0x8] sm:$0xf] }
 0x14d   :  { %317 = vrot.lane.b32.xlu0 %v315_v15, %s928_s16  ;;  %v866_v31 = vpack.c.bf16 %v161_v29, %v161_v29  ;;  %v213_v32 = vld [vmem:[#allocation2 + $0x10] sm:$0xf] }
 0x14e   :  { %v225_v30 = vrot.slane %v869_v28, 6  ;;  %v870_v34 = vpack.c.bf16 %v213_v32, %v213_v32  ;;  %v250_v35 = vld [vmem:[#allocation2 + $0x10] sm:$0xf] }
 0x14f   :  { %149 = vrot.lane.b32.xlu1 %v864_v18, %s931_s1  ;;  %v174_v33 = vrot.slane %v866_v31, 6  ;;  %v872_v38 = vpack.c.bf16 %v250_v35, %v249_v36  ;;  %v270_v18 = vrot.slane %v268_v42, 4 }
 0x150   :  { %v226_v37 = vrot.slane %v870_v34, 6 }
 0x151   :  { %342 = vrot.lane.b32.xlu0 %v878_v21, %s933_s20  ;;  %v263_v40 = vrot.slane %v872_v38, 6 }
 0x153   :  { %175 = vrot.lane.b32.xlu1 %v173_v23, %s934_s21 }
 0x157   :  { %202 = vrot.lane.b32.xlu1 %v868_v27, %s932_s19 }
 0x15b   :  { %227 = vrot.lane.b32.xlu1 %v225_v30, %s935_s22 }
 0x15f   :  { %177 = vrot.lane.b32.xlu1 %v174_v33, %s934_s21 }
 0x163   :  { %229 = vrot.lane.b32.xlu1 %v226_v37, %s935_s22  ;;  %v919_v37 = vld [vmem:[%s1120_s2] sm:$0xff]  }
 0x167   :  { %265 = vrot.lane.b32.xlu1 %v263_v40, %s926_s4 }
 0x16b   :  { %344 = vrot.lane.b32.xlu1 %v879_v41, %s933_s20 }
 0x1b9   :  { %v148_v45 = vpop.permute.xlu1 %147 }
 0x1ba   :  { %v151_v58 = vrot.slane %v148_v45, 4 }
 0x1bb   :  { %v291_v46 = vpop.permute.xlu0 %290 }
 0x1bc   :  { %v294_v48 = vrot.slane %v291_v46, 4 }
 0x1bd   :  { %v201_v49 = vpop.permute.xlu1 %200 }
 0x1be   :  { %v296_v50 = vsel %vm52_vm0, %v294_v48, %v295_v47  ;;  %v204_v2 = vrot.slane %v201_v49, 4  ;;  %v449_v48 = vld [vmem:[%s1121_s7] sm:$0xff] }
 0x1bf   :  { %v298_v51 = vsel %vm297_vm1, %v291_v46, %v296_v50  ;;  %v318_v54 = vpop.permute.xlu0 %317  ;;  %v936_v50 = vmov 0.0|0.0  }
 0x1c0   :  { %300 = vst [vmem:[#allocation3 + $0x18] sm:$0x33] %v298_v51  ;;  %v321_v56 = vrot.slane %v318_v54, 4 }
 0x1c1   :  { %v150_v57 = vpop.permute.xlu1 %149 }
 0x1c2   :  { %v323_v59 = vsel %vm52_vm0, %v321_v56, %v322_v55  ;;  %v152_v60 = vrot.slane %v150_v57, 4 }
 0x1c3   :  { %v325_v61 = vsel %vm324_vm2, %v318_v54, %v323_v59  ;;  %v343_v20 = vpop.permute.xlu0 %342 }
 0x1c4   :  { %327 = vst [vmem:[#allocation3 + $0x18] sm:$0xcc] %v325_v61  ;;  %v154_v62 = vsel %vm52_vm0, %v151_v58, %v152_v60  ;;  %v346_v25 = vrot.slane %v343_v20, 4 }
 0x1c5   :  { %v156_v63 = vsel %vm155_vm3, %v148_v45, %v154_v62  ;;  %v176_v0 = vpop.permute.xlu1 %175 }
 0x1c6   :  { %158 = vst [vmem:[#allocation3] sm:$0x33] %v156_v63  ;;  %v179_v8 = vrot.slane %v176_v0, 4 }
 0x1c9   :  { %v203_v1 = vpop.permute.xlu1 %202 }
 0x1ca   :  { %v205_v3 = vrot.slane %v203_v1, 4 }
 0x1cc   :  { %v206_v4 = vsel %vm52_vm0, %v204_v2, %v205_v3 }
 0x1cd   :  { %v208_v5 = vsel %vm207_vm4, %v201_v49, %v206_v4  ;;  %v228_v6 = vpop.permute.xlu1 %227  ;;  %v448_v49 = vld [vmem:[%s1122_s6] sm:$0xff] }
 0x1ce   :  { %210 = vst [vmem:[#allocation3 + $0x8] sm:$0x33] %v208_v5  ;;  %v231_v13 = vrot.slane %v228_v6, 4 }
 0x1d1   :  { %v178_v7 = vpop.permute.xlu1 %177 }
 0x1d2   :  { %v180_v9 = vrot.slane %v178_v7, 4 }
 0x1d4   :  { %v181_v10 = vsel %vm52_vm0, %v179_v8, %v180_v9 }
 0x1d5   :  { %v183_v11 = vsel %vm182_vm5, %v176_v0, %v181_v10  ;;  %v230_v12 = vpop.permute.xlu1 %229 }
 0x1d6   :  { %185 = vst [vmem:[#allocation3] sm:$0xcc] %v183_v11  ;;  %v232_v14 = vrot.slane %v230_v12, 4 }
 0x1d8   :  { %v233_v15 = vsel %vm52_vm0, %v231_v13, %v232_v14 }
 0x1d9   :  { %v235_v16 = vsel %vm234_vm6, %v228_v6, %v233_v15  ;;  %v266_v17 = vpop.permute.xlu1 %265 }
 0x1da   :  { %237 = vst [vmem:[#allocation3 + $0x8] sm:$0xcc] %v235_v16  ;;  %v269_v19 = vrot.slane %v266_v17, 4 }
 0x1dc   :  { %v271_v21 = vsel %vm52_vm0, %v269_v19, %v270_v18 }
 0x1dd   :  { %v273_v23 = vsel %vm272_vm7, %v266_v17, %v271_v21  ;;  %v345_v24 = vpop.permute.xlu1 %344 }
 0x1de   :  { %275 = vst [vmem:[#allocation3 + $0x10] sm:$0xcc] %v273_v23  ;;  %v347_v26 = vrot.slane %v345_v24, 4 }
 0x1e0   :  { %v348_v27 = vsel %vm52_vm0, %v346_v25, %v347_v26 }
 0x1e1   :  { %v350_v28 = vsel %vm349_vm8, %v343_v20, %v348_v27  ;;  %v911_v29 = vld [vmem:[#allocation3 + $0x4] ss:$8 sps:$4 sm:$0xff]   ;;  %v913_v30 = vld [vmem:[#allocation3] ss:$8 sps:$4 sm:$0xff]  }
 0x1e2   :  { %352 = vst [vmem:[#allocation3 + $0x20] sm:$0x33] %v350_v28  ;;  %401 = vmatprep.subr.bf16.mxu0 %v911_v29 }
 0x1e3   :  { %402 = vmatpush1.bf16.msra.mxu0 %v913_v30 }
 0x1e5   :  { %v914_v31 = vld [vmem:[#allocation3 + $0x14] ss:$8 sps:$4 sm:$0xff]   ;;  %v916_v32 = vld [vmem:[#allocation3 + $0x10] ss:$8 sps:$4 sm:$0xff]  }
 0x1e6   :  { %403 = vmatprep.subr.bf16.mxu0 %v914_v31 }
 0x1e7   :  { %404 = vmatpush1.bf16.msra.mxu0 %v916_v32 }
 0x1e9   :  { %v359_v33 = vld [vmem:[#allocation3 + $0x20] sm:$0x33] }
 0x1ea   :  { %v831_v34 = vcombine.high %v359_v33, %v359_v33  ;;  %v830_v35 = vcombine.low %v359_v33, %v359_v33 }
 0x1ec   :  { %832 = vmatprep.subr.msk.bf16.mxu0 %vm394_vm9, %v831_v34  ;;  %v396_v36 = vsel %vm394_vm9, %v830_v35, 0 }
 0x1ed   :  { %406 = vmatpush1.bf16.msra.mxu0 %v396_v36 }
 0x1f0   :  { %833 = vmatmul.mubr.msk.bf16.vlgmr.msra.gmra.mrb[0].mxu0 %vm390_vm10, %v919_v37 }
 0x2c3   :  { %v435_v38 = vpop.f32.mrb[0].mxu0 }
 0x2c4   :  { %v446_v39 = vmul.f32 %v435_v38, %v1018_v52  ;;  %v437_v40 = vpop.f32.mrb[1].mxu0 }
 0x2c5   :  { %v447_v41 = vmul.f32 %v437_v40, %v1020_v53  ;;  %v1058_v42 = vpop.f32.mrb[2].mxu0 }
 0x2c6   :  { %v1060_v43 = vpop.f32.mrb[3].mxu0  ;;  %v450_v44 = vmul.f32 %v446_v39, %v446_v39 }
 0x2c7   :  { %v452_v45 = vadd.f32 %v447_v41, %v446_v39  ;;  %v451_v46 = vmul.f32 %v447_v41, %v447_v41 }
 0x2c9   :  { %453 = vadd.xlane.f32.xlu0 %v452_v45  ;;  %v455_v47 = vadd.f32 %v451_v46, %v450_v44 }
 0x2cb   :  { %456 = vadd.xlane.f32.xlu1 %v455_v47 }
 0x2dc   :  { %477 = vperm.xlu1 %910, %v449_v48  }
 0x2df   :  { %470 = vperm.xlu0 %909, %v448_v49  }
 0x2e0   :  { %611 = vrot.lane.b32.xlu1 %v936_v50, %s926_s4 }
 0x356   :  { %v454_v51 = vpop.xlane.xlu0 %453 }
 0x357   :  { %v458_v54 = vmul.f32 0.0078125, %v454_v51 }
 0x358   :  { %v457_v55 = vpop.xlane.xlu1 %456 }
 0x359   :  { %v460_v56 = vmul.f32 %v458_v54, %v458_v54  ;;  %v459_v57 = vmul.f32 0.0078125, %v457_v55  ;;  %v462_v60 = vsub.f32 %v446_v39, %v458_v54  ;;  %v463_v61 = vsub.f32 %v447_v41, %v458_v54 }
 0x35b   :  { %v461_v58 = vsub.f32 %v459_v57, %v460_v56 }
 0x35c   :  { %v478_v4 = vpop.permute.xlu1 %477 }
 0x35d   :  { %v464_v59 = vadd.f32 1e-05, %v461_v58 }
 0x35e   :  { %v471_v1 = vpop.permute.xlu0 %470 }
 0x35f   :  { %922 = vrsqrt.f32 %v464_v59 }
 0x369   :  { %v923_v62 = vpop.eup %922 }
 0x36a   :  { %v466_v63 = vmul.f32 %v923_v62, %v462_v60  ;;  %v467_v0 = vmul.f32 %v923_v62, %v463_v61 }
 0x36c   :  { %v473_v2 = vmul.f32 %v471_v1, %v466_v63  ;;  %v474_v3 = vmul.f32 %v471_v1, %v467_v0 }
 0x36e   :  { %v480_v5 = vadd.f32 %v478_v4, %v473_v2  ;;  %v481_v6 = vadd.f32 %v478_v4, %v474_v3 }
 0x370   :  { %v482_v7 = vmax.f32 %v480_v5, 0.0  ;;  %v483_v8 = vmax.f32 %v481_v6, 0.0 }
 0x372   :  { %v484_v9 = vmul.f32 %v482_v7, %v1018_v52  ;;  %v485_v10 = vmul.f32 %v483_v8, %v1020_v53 }
 0x374   :  { %486 = vst [vmem:[#allocation2 + $0x8] sm:$0xff] %v484_v9  ;;  %487 = vst [vmem:[#allocation2 + $0x10] sm:$0xff] %v485_v10  ;;  %v881_v11 = vpack.c.bf16 %v485_v10, %v485_v10  ;;  %v880_v12 = vpack.c.bf16 %v484_v9, %v925_v22  ;;  %v889_v52 = vpack.c.bf16 %v485_v10, %v484_v9  ;;  %v612_v22 = vpop.permute.xlu1 %611 }
 0x375   :  { %v614_v41 = vrot.slane %v612_v22, 4 }
 0x376   :  { %504 = vrot.lane.b32.xlu1 %v881_v11, %s931_s1  ;;  %502 = vrot.lane.b32.xlu0 %v880_v12, %s931_s1 }
 0x37a   :  { %528 = vrot.lane.b32.xlu1 %v881_v11, %s934_s21  ;;  %526 = vrot.lane.b32.xlu0 %v880_v12, %s934_s21 }
 0x37e   :  { %552 = vrot.lane.b32.xlu1 %v881_v11, %s932_s19  ;;  %550 = vrot.lane.b32.xlu0 %v880_v12, %s932_s19 }
 0x382   :  { %576 = vrot.lane.b32.xlu1 %v881_v11, %s935_s22  ;;  %574 = vrot.lane.b32.xlu0 %v880_v12, %s935_s22  ;;  %v691_v11 = vld [vmem:[%s1123_s3] sm:$0xf] }
 0x386   :  { %609 = vrot.lane.b32.xlu0 %v889_v52, %s926_s4  ;;  %635 = vrot.lane.b32.xlu1 %v936_v50, %s927_s5 }
 0x38a   :  { %633 = vrot.lane.b32.xlu0 %v889_v52, %s927_s5  ;;  %659 = vrot.lane.b32.xlu1 %v936_v50, %s928_s16 }
 0x38e   :  { %657 = vrot.lane.b32.xlu0 %v889_v52, %s928_s16  ;;  %683 = vrot.lane.b32.xlu1 %v936_v50, %s933_s20 }
 0x392   :  { %681 = vrot.lane.b32.xlu0 %v889_v52, %s933_s20 }
 0x3e8   :  { %v503_v53 = vpop.permute.xlu0 %502  ;;  %v505_v13 = vpop.permute.xlu1 %504 }
 0x3e9   :  { %v506_v14 = vrot.slane %v503_v53, 4  ;;  %v507_v15 = vrot.slane %v505_v13, 4 }
 0x3eb   :  { %v508_v20 = vsel %vm52_vm0, %v506_v14, %v507_v15 }
 0x3ec   :  { %v527_v16 = vpop.permute.xlu0 %526  ;;  %v529_v17 = vpop.permute.xlu1 %528  ;;  %v509_v25 = vsel %vm155_vm3, %v503_v53, %v508_v20 }
 0x3ed   :  { %v530_v18 = vrot.slane %v527_v16, 4  ;;  %v531_v19 = vrot.slane %v529_v17, 4 }
 0x3ef   :  { %v532_v21 = vsel %vm52_vm0, %v530_v18, %v531_v19 }
 0x3f0   :  { %v551_v23 = vpop.permute.xlu0 %550  ;;  %v553_v24 = vpop.permute.xlu1 %552  ;;  %v533_v26 = vsel %vm182_vm5, %v527_v16, %v532_v21 }
 0x3f1   :  { %v554_v27 = vrot.slane %v551_v23, 4  ;;  %v555_v28 = vrot.slane %v553_v24, 4  ;;  %v852_v29 = vcombine.high %v509_v25, %v533_v26  ;;  %v851_v30 = vcombine.low %v509_v25, %v533_v26 }
 0x3f3   :  { %756 = vmatprep.subr.bf16.mxu1 %v852_v29  ;;  %v556_v33 = vsel %vm52_vm0, %v554_v27, %v555_v28 }
 0x3f4   :  { %v575_v31 = vpop.permute.xlu0 %574  ;;  %757 = vmatpush1.bf16.msra.mxu1 %v851_v30  ;;  %v577_v32 = vpop.permute.xlu1 %576  ;;  %v557_v38 = vsel %vm207_vm4, %v551_v23, %v556_v33 }
 0x3f5   :  { %v578_v34 = vrot.slane %v575_v31, 4  ;;  %v579_v35 = vrot.slane %v577_v32, 4 }
 0x3f7   :  { %v580_v36 = vsel %vm52_vm0, %v578_v34, %v579_v35 }
 0x3f8   :  { %v610_v37 = vpop.permute.xlu0 %609  ;;  %v581_v39 = vsel %vm234_vm6, %v575_v31, %v580_v36  ;;  %v636_v40 = vpop.permute.xlu1 %635 }
 0x3f9   :  { %v613_v44 = vrot.slane %v610_v37, 4  ;;  %v854_v45 = vcombine.high %v557_v38, %v581_v39  ;;  %v853_v46 = vcombine.low %v557_v38, %v581_v39  ;;  %v638_v56 = vrot.slane %v636_v40, 4 }
 0x3fb   :  { %v615_v47 = vsel %vm52_vm0, %v613_v44, %v614_v41  ;;  %758 = vmatprep.subr.bf16.mxu1 %v854_v45 }
 0x3fc   :  { %v616_v48 = vsel %vm272_vm7, %v610_v37, %v615_v47  ;;  %v634_v49 = vpop.permute.xlu0 %633  ;;  %759 = vmatpush1.bf16.msra.mxu1 %v853_v46  ;;  %v660_v50 = vpop.permute.xlu1 %659 }
 0x3fd   :  { %v855_v51 = vcombine.low %v889_v52, %v616_v48  ;;  %v856_v54 = vcombine.high %v889_v52, %v616_v48  ;;  %v637_v55 = vrot.slane %v634_v49, 4  ;;  %v662_v57 = vrot.slane %v660_v50, 4 }
 0x3ff   :  { %760 = vmatprep.subr.bf16.mxu1 %v856_v54  ;;  %v639_v60 = vsel %vm52_vm0, %v637_v55, %v638_v56 }
 0x400   :  { %v658_v58 = vpop.permute.xlu0 %657  ;;  %761 = vmatpush1.bf16.msra.mxu1 %v855_v51  ;;  %v684_v59 = vpop.permute.xlu1 %683  ;;  %v640_v1 = vsel %vm297_vm1, %v634_v49, %v639_v60 }
 0x401   :  { %v661_v61 = vrot.slane %v658_v58, 4  ;;  %v686_v63 = vrot.slane %v684_v59, 4 }
 0x403   :  { %v663_v62 = vsel %vm52_vm0, %v661_v61, %v662_v57 }
 0x404   :  { %v682_v0 = vpop.permute.xlu0 %681  ;;  %v664_v2 = vsel %vm324_vm2, %v658_v58, %v663_v62 }
 0x405   :  { %v685_v3 = vrot.slane %v682_v0, 4  ;;  %v858_v4 = vcombine.high %v640_v1, %v664_v2  ;;  %v857_v5 = vcombine.low %v640_v1, %v664_v2 }
 0x407   :  { %v687_v6 = vsel %vm52_vm0, %v685_v3, %v686_v63  ;;  %762 = vmatprep.subr.bf16.mxu1 %v858_v4 }
 0x408   :  { %v688_v7 = vsel %vm349_vm8, %v682_v0, %v687_v6  ;;  %763 = vmatpush1.bf16.msra.mxu1 %v857_v5 }
 0x409   :  { %v860_v8 = vcombine.high %v688_v7, %v688_v7  ;;  %v859_v9 = vcombine.low %v688_v7, %v688_v7 }
 0x40b   :  { %861 = vmatprep.subr.msk.bf16.mxu1 %vm52_vm0, %v860_v8  ;;  %v751_v10 = vsel %vm52_vm0, %v859_v9, 0 }
 0x40c   :  { %765 = vmatpush1.bf16.msra.mxu1 %v751_v10 }
 0x40f   :  { %862 = vmatmul.mubr.msk.bf16.vlgmr.msra.gmra.mrb[0].mxu1 %vm746_vm11, %v691_v11 }
 0x4e2   :  { %v790_v12 = vpop.f32.mrb[0].mxu1 }
 0x4e3   :  { %v797_v52 = vadd.f32 %v790_v12, %v1058_v42  ;;  %v792_v22 = vpop.f32.mrb[1].mxu1 }
 0x4e4   :  { %v798_v53 = vadd.f32 %v792_v22, %v1060_v43  ;;  %v794_v13 = vpop.f32.mrb[2].mxu1 }
 0x4e5   :  { %799 = vst [vmem:[%s1124_s8] sm:$0xff] %v797_v52  ;;  %v795_v14 = vpop.f32.mrb[3].mxu1 }
 0x4e6   :  { %800 = vst [vmem:[%s1124_s8 + $0x8] sm:$0xff] %v798_v53 }

</bundles_post_ra>
